<compile_context>
chip_gen: v6e
topology: v6e:2x2x1
jax: 0.10.0
libtpu: 0.0.40
codegen_flags: <defaults>
</compile_context>

<pallas_src>
import functools
import math

import jax
import jax.numpy as jnp
import numpy as np
from jax import lax
from jax.experimental import pallas as pl
from jax.experimental.pallas import tpu as pltpu

_NEG = -1e30


# ---------------------------------------------------------------------------
# Kernels
# ---------------------------------------------------------------------------

def _proj_kernel(x_ref, w_ref, b_ref, proj_ref):
    # Fused Q|K|V|skip projection: one 4H(=128)-lane-wide MXU pass; bf16 output
    # so the attention kernel never re-casts q/k/v (review item: proj in bf16).
    acc = jnp.dot(x_ref[...].astype(jnp.bfloat16), w_ref[...],
                  preferred_element_type=jnp.float32) + b_ref[...]
    proj_ref[...] = acc.astype(jnp.bfloat16)


def _attn_kernel(hidden_dim, src_starts_ref, src_counts_ref,
                 adj_ref, qs_ref, kv_ref, out_ref, m_ref, l_ref, acc_ref):
    """Flash-style masked attention over (dst_block, src_block) grid."""
    H = hidden_dim
    d = pl.program_id(0)
    s = pl.program_id(1)

    @pl.when(s == 0)
    def _init():
        m_ref[...] = jnp.full(m_ref.shape, _NEG, m_ref.dtype)
        l_ref[...] = jnp.zeros(l_ref.shape, l_ref.dtype)
        acc_ref[...] = jnp.zeros(acc_ref.shape, acc_ref.dtype)

    # Skip src blocks outside this dst block's graph span (block-diagonal adj).
    @pl.when(s < src_counts_ref[d])
    def _step():
        mask = adj_ref[...] != 0                      # int8 -> bool, per tile
        # proj is laid out as [q | k | v | skip]; sub-128-lane slices of the
        # 128-lane tile are accepted (H=32 => MXU <15% utilized anyway; the
        # EUP/XLU/VPU softmax path is the binder).
        q = qs_ref[:, 0 * H:1 * H]                    # bf16, dst block
        k = kv_ref[:, 1 * H:2 * H]                    # bf16, src block
        v = kv_ref[:, 2 * H:3 * H]                    # bf16, src block
        # Logits: contract on the feature axis (no k.T materialization);
        # the 1/sqrt(H) scale is pre-folded into the Q projection.
        s_log = lax.dot_general(q, k, (((1,), (1,)), ((), ())),
                                preferred_element_type=jnp.float32)
        # Single masking path: masked row-max + masked exp (no additive bias).
        row_max = jnp.max(jnp.where(mask, s_log, _NEG), axis=-1, keepdims=True)
        m_new = jnp.maximum(m_ref[...], row_max)
        corr = jnp.exp(m_ref[...] - m_new)
        e = jnp.where(mask, jnp.exp(s_log - m_new), 0.0)
        l_ref[...] = corr * l_ref[...] + jnp.sum(e, axis=-1, keepdims=True)
        acc_ref[...] = corr * acc_ref[...] + jnp.dot(
            e.astype(jnp.bfloat16), v, preferred_element_type=jnp.float32)
        m_ref[...] = m_new
        # TODO(synk): on v6e/v7x the exp could run in bf16 (~2x EUP rate);
        # kept f32 so the same kernel stays valid on v5e.

    @pl.when(s == pl.num_programs(1) - 1)
    def _finalize():
        # Normalize AFTER the message matmul ([dst, H] multiply instead of a
        # [dst, src] alpha buffer). Rows with no incoming edges: acc == 0.
        inv = pl.reciprocal(jnp.maximum(l_ref[...], 1e-30), approx=True)
        skip = qs_ref[:, 3 * H:4 * H].astype(jnp.float32)
        out_ref[...] = jnp.maximum(acc_ref[...] * inv + skip, 0.0)
        # TODO(synk): optionally pad the hidden state to 128 lanes for a fully
        # unmasked vst on the per-layer output (H=32 here).


def _head_kernel(pool_ref, x_ref, w1_ref, b1_ref, w2_ref, b2_ref, out_ref):
    # global_add_pool (one-hot pooling matmul) + lin1/relu + lin2.
    pooled = jnp.dot(pool_ref[...], x_ref[...].astype(jnp.bfloat16),
                     preferred_element_type=jnp.float32)
    h = jnp.maximum(
        jnp.dot(pooled.astype(jnp.bfloat16), w1_ref[...],
                preferred_element_type=jnp.float32) + b1_ref[...], 0.0)
    # F.dropout(training=False) is identity.
    out_ref[...] = (jnp.dot(h.astype(jnp.bfloat16), w2_ref[...],
                            preferred_element_type=jnp.float32) + b2_ref[...])


# ---------------------------------------------------------------------------
# Wrapper
# ---------------------------------------------------------------------------

def _round_up(n, m):
    return ((n + m - 1) // m) * m


def _pick_tiles(n, dst_tile, src_tile):
    if n <= max(dst_tile, src_tile):
        n_pad = _round_up(n, 8)
        return n_pad, n_pad, n_pad                     # single block each way
    assert dst_tile % 8 == 0 and src_tile % 128 == 0
    step = int(np.lcm(dst_tile, src_tile))
    return _round_up(n, step), dst_tile, src_tile


def _graph_spans(batch, n_nodes, n_pad, dst_tile, src_tile):
    """Per-dst-block [first_src_block, num_src_blocks] covering every graph the
    block's destination nodes belong to (requires PyG-sorted batch vector)."""
    n_dst = n_pad // dst_tile
    n_src = n_pad // src_tile
    starts = np.zeros((n_dst,), np.int32)
    counts = np.ones((n_dst,), np.int32)
    if batch is None:
        counts[:] = n_src
        return starts, counts
    b = np.asarray(batch).astype(np.int64)
    assert np.all(np.diff(b) >= 0), "batch vector must be sorted (PyG layout)"
    n_graphs = int(b.max()) + 1
    first = np.array([np.nonzero(b == g)[0].min() for g in range(n_graphs)])
    last = np.array([np.nonzero(b == g)[0].max() for g in range(n_graphs)])
    for d in range(n_dst):
        lo, hi = d * dst_tile, min((d + 1) * dst_tile, n_nodes)
        if lo >= n_nodes:                              # pure padding block
            continue
        g0, g1 = int(b[lo]), int(b[hi - 1])
        node_lo, node_hi = int(first[g0]), int(last[g1]) + 1
        sb0 = node_lo // src_tile
        sb1 = -(-node_hi // src_tile)
        starts[d] = sb0
        counts[d] = max(sb1 - sb0, 1)
    return starts, counts


def transformer_net_forward(x, adj, pool, params, *, num_layers, hidden_dim,
                            output_dim, batch=None, dst_tile=256, src_tile=512):
    # dst_tile/src_tile defaults are sized for v7x's 64 MiB VMEM (per review);
    # v6e/v5e (128 MiB physical) tolerate larger tiles.
    H = hidden_dim
    n_nodes, in_dim0 = x.shape
    num_graphs = pool.shape[0]
    scale = 1.0 / math.sqrt(H)
    out_pad = _round_up(output_dim, 128)               # lane-dense head output

    n_pad, dst_tile, src_tile = _pick_tiles(n_nodes, dst_tile, src_tile)
    n_dst = n_pad // dst_tile

    # Padded / repacked inputs (adj as int8: 4x less HBM/VMEM traffic).
    x_p = jnp.zeros((n_pad, in_dim0), jnp.float32).at[:n_nodes, :].set(
        x.astype(jnp.float32))
    adj_i8 = jnp.zeros((n_pad, n_pad), jnp.int8).at[:n_nodes, :n_nodes].set(
        (adj > 0).astype(jnp.int8))
    pool_p = jnp.zeros((num_graphs, n_pad), jnp.bfloat16).at[:, :n_nodes].set(
        pool.astype(jnp.bfloat16))

    starts_np, counts_np = _graph_spans(batch, n_nodes, n_pad, dst_tile, src_tile)
    src_steps = int(counts_np.max())
    total_src_blocks = int(counts_np.sum())
    starts = jnp.asarray(starts_np, jnp.int32)
    counts = jnp.asarray(counts_np, jnp.int32)

    cparams_attn = pltpu.CompilerParams(
        dimension_semantics=("parallel", "arbitrary"),
        vmem_limit_bytes=32 * 1024 * 1024)
    cparams_proj = pltpu.CompilerParams(
        dimension_semantics=("parallel",),
        vmem_limit_bytes=32 * 1024 * 1024)

    h_nodes = x_p
    for lp in params["layers"]:
        lin = h_nodes.shape[1]
        # Fuse Q/K/V/skip weights; fold the softmax scale into the Q slice.
        w_fused = jnp.concatenate(
            [lp["wq"] * scale, lp["wk"], lp["wv"], lp["ws"]], axis=1
        ).astype(jnp.bfloat16)
        b_fused = jnp.concatenate(
            [lp["bq"] * scale, lp["bk"], lp["bv"], lp["bs"]], axis=1)

        # --- fused projection ([N, 4H] bf16), node-tiled -------------------
        proj = pl.pallas_call(
            _proj_kernel,
            out_shape=jax.ShapeDtypeStruct((n_pad, 4 * H), jnp.bfloat16),
            grid=(n_dst,),
            in_specs=[
                pl.BlockSpec((dst_tile, lin), lambda i: (i, 0)),
                pl.BlockSpec((lin, 4 * H), lambda i: (0, 0)),
                pl.BlockSpec((1, 4 * H), lambda i: (0, 0)),
            ],
            out_specs=pl.BlockSpec((dst_tile, 4 * H), lambda i: (i, 0)),
            compiler_params=cparams_proj,
            cost_estimate=pl.CostEstimate(
                flops=2 * n_pad * lin * 4 * H,
                transcendentals=0,
                bytes_accessed=4 * n_pad * lin + 2 * lin * 4 * H
                + 2 * n_pad * 4 * H),
        )(h_nodes, w_fused, b_fused)

        # --- flash-style attention over (dst_block, src_block) -------------
        attn_flops = 4 * H * dst_tile * src_tile * total_src_blocks
        attn_exps = dst_tile * src_tile * total_src_blocks
        attn_bytes = (dst_tile * src_tile * total_src_blocks          # adj i8
                      + 2 * 4 * H * (n_pad + src_tile * total_src_blocks)
                      + 4 * n_pad * H)
        h_nodes = pl.pallas_call(
            functools.partial(_attn_kernel, H),
            out_shape=jax.ShapeDtypeStruct((n_pad, H), jnp.float32),
            grid_spec=pltpu.PrefetchScalarGridSpec(
                num_scalar_prefetch=2,
                grid=(n_dst, src_steps),
                in_specs=[
                    # adj tile: (dst block, in-span src block, clamped)
                    pl.BlockSpec(
                        (dst_tile, src_tile),
                        lambda d, s, st, ct: (d, st[d] + jnp.minimum(s, ct[d] - 1))),
                    # q|skip side of the projection (dst block)
                    pl.BlockSpec((dst_tile, 4 * H),
                                 lambda d, s, st, ct: (d, 0)),
                    # k|v side of the projection (src block)
                    pl.BlockSpec(
                        (src_tile, 4 * H),
                        lambda d, s, st, ct: (st[d] + jnp.minimum(s, ct[d] - 1), 0)),
                ],
                out_specs=pl.BlockSpec((dst_tile, H),
                                       lambda d, s, st, ct: (d, 0)),
                scratch_shapes=[
                    pltpu.VMEM((dst_tile, 1), jnp.float32),   # running max m
                    pltpu.VMEM((dst_tile, 1), jnp.float32),   # running sum l
                    pltpu.VMEM((dst_tile, H), jnp.float32),   # running acc
                ]),
            compiler_params=cparams_attn,
            cost_estimate=pl.CostEstimate(
                flops=attn_flops, transcendentals=attn_exps,
                bytes_accessed=attn_bytes),
        )(starts, counts, adj_i8, proj, proj)

    # --- global_add_pool + MLP head (small; single invocation) --------------
    w2p = jnp.zeros((H, out_pad), jnp.float32).at[:, :output_dim].set(params["w2"])
    b2p = jnp.zeros((1, out_pad), jnp.float32).at[:, :output_dim].set(params["b2"])
    out_padded = pl.pallas_call(
        _head_kernel,
        out_shape=jax.ShapeDtypeStruct((num_graphs, out_pad), jnp.float32),
        in_specs=[pl.BlockSpec(memory_space=pltpu.MemorySpace.VMEM)] * 6,
        out_specs=pl.BlockSpec(memory_space=pltpu.MemorySpace.VMEM),
        compiler_params=pltpu.CompilerParams(vmem_limit_bytes=32 * 1024 * 1024),
    )(pool_p, h_nodes, params["w1"].astype(jnp.bfloat16), params["b1"],
      w2p.astype(jnp.bfloat16), b2p)
    # TODO(synk): for very large N, tile the pooling matmul over node blocks.
    return out_padded[:, :output_dim]


# ---------------------------------------------------------------------------
# Pure-JAX reference (same math, no Pallas) for validation
# ---------------------------------------------------------------------------

def transformer_net_reference(x, adj, pool, params, hidden_dim):
    scale = 1.0 / math.sqrt(hidden_dim)
    for lp in params["layers"]:
        q = x @ lp["wq"] + lp["bq"]
        k = x @ lp["wk"] + lp["bk"]
        v = x @ lp["wv"] + lp["bv"]
        s = (q @ k.T) * scale
        s = jnp.where(adj > 0.0, s, -1e30)
        e = jnp.exp(s - jnp.max(s, axis=-1, keepdims=True)) * adj
        alpha = e / jnp.maximum(jnp.sum(e, axis=-1, keepdims=True), 1e-30)
        x = jnp.maximum(alpha @ v + x @ lp["ws"] + lp["bs"], 0.0)
    pooled = pool @ x
    h = jnp.maximum(pooled @ params["w1"] + params["b1"], 0.0)
    return h @ params["w2"] + params["b2"]


def make_params(key, input_dim, hidden_dim, output_dim, num_layers):
    def nxt():
        nonlocal key
        key, sub = jax.random.split(key)
        return sub

    layers = []
    for l in range(num_layers):
        in_dim = input_dim if l == 0 else hidden_dim
        layers.append({
            "wq": 0.1 * jax.random.normal(nxt(), (in_dim, hidden_dim), jnp.float32),
            "bq": 0.1 * jax.random.normal(nxt(), (1, hidden_dim), jnp.float32),
            "wk": 0.1 * jax.random.normal(nxt(), (in_dim, hidden_dim), jnp.float32),
            "bk": 0.1 * jax.random.normal(nxt(), (1, hidden_dim), jnp.float32),
            "wv": 0.1 * jax.random.normal(nxt(), (in_dim, hidden_dim), jnp.float32),
            "bv": 0.1 * jax.random.normal(nxt(), (1, hidden_dim), jnp.float32),
            "ws": 0.1 * jax.random.normal(nxt(), (in_dim, hidden_dim), jnp.float32),
            "bs": 0.1 * jax.random.normal(nxt(), (1, hidden_dim), jnp.float32),
        })
    return {
        "layers": layers,
        "w1": 0.1 * jax.random.normal(nxt(), (hidden_dim, hidden_dim), jnp.float32),
        "b1": 0.1 * jax.random.normal(nxt(), (1, hidden_dim), jnp.float32),
        "w2": 0.1 * jax.random.normal(nxt(), (hidden_dim, output_dim), jnp.float32),
        "b2": 0.1 * jax.random.normal(nxt(), (1, output_dim), jnp.float32),
    }


if __name__ == "__main__":
    INPUT_DIM, HIDDEN_DIM, OUTPUT_DIM = 16, 32, 8
    NUM_LAYERS = 2
    N_NODES, N_GRAPHS, NODES_PER_GRAPH = 16, 2, 8

    key = jax.random.PRNGKey(0)
    key, xk = jax.random.split(key)
    x = jax.random.normal(xk, (N_NODES, INPUT_DIM), jnp.float32)

    # batch vector: first 8 nodes -> graph 0, next 8 -> graph 1 (PyG-sorted)
    batch = np.concatenate([np.zeros(NODES_PER_GRAPH, np.int32),
                            np.ones(NODES_PER_GRAPH, np.int32)])

    # deterministic edge_index: bidirectional ring within each graph
    src, dst = [], []
    for g in range(N_GRAPHS):
        base = g * NODES_PER_GRAPH
        for i in range(NODES_PER_GRAPH):
            a, b = base + i, base + (i + 1) % NODES_PER_GRAPH
            src += [a, b]
            dst += [b, a]
    src = np.asarray(src)
    dst = np.asarray(dst)

    # dense adjacency mask adj[dst, src] = 1.0 and one-hot pooling matrix
    adj_np = np.zeros((N_NODES, N_NODES), np.float32)
    adj_np[dst, src] = 1.0
    pool_np = np.zeros((N_GRAPHS, N_NODES), np.float32)
    pool_np[batch, np.arange(N_NODES)] = 1.0

    adj = jnp.asarray(adj_np)
    pool = jnp.asarray(pool_np)

    params = make_params(key, INPUT_DIM, HIDDEN_DIM, OUTPUT_DIM, NUM_LAYERS)

    out = transformer_net_forward(
        x, adj, pool, params,
        num_layers=NUM_LAYERS, hidden_dim=HIDDEN_DIM, output_dim=OUTPUT_DIM,
        batch=batch,
    )
    out = jax.block_until_ready(out)

    ref = transformer_net_reference(x, adj, pool, params, HIDDEN_DIM)
    # bf16 MXU operands + approximate EUP reciprocal => loosened tolerances
    # vs. the pure-f32 reference.
    np.testing.assert_allclose(np.asarray(out), np.asarray(ref),
                               rtol=5e-2, atol=5e-2)

    print("KERNEL_OK")
</pallas_src>

<mosaic_0001>
module attributes {stable_mosaic.version = 11 : i64} {
  func.func @_proj_kernel(%arg0: i32, %arg1: memref<16x16xf32, #tpu.memory_space<vmem>>, %arg2: memref<16x128xbf16, #tpu.memory_space<vmem>>, %arg3: memref<1x128xf32, #tpu.memory_space<vmem>>, %arg4: memref<16x128xbf16, #tpu.memory_space<vmem>>) attributes {dimension_semantics = [#tpu.dimension_semantics<parallel>], iteration_bounds = array<i64: 1>, scalar_prefetch = 0 : i64, scratch_operands = 0 : i64, tpu.core_type = #tpu.core_type<tc>, window_params = [{transform_indices = @transform_0, window_bounds = array<i64: 16, 16>}, {pipeline_mode = #tpu.pipeline_mode<synchronous>, transform_indices = @transform_1, window_bounds = array<i64: 16, 128>}, {pipeline_mode = #tpu.pipeline_mode<synchronous>, transform_indices = @transform_2, window_bounds = array<i64: 1, 128>}, {transform_indices = @transform_3, window_bounds = array<i64: 16, 128>}]} {
    %c0 = arith.constant 0 : index
    %c0_0 = arith.constant 0 : index
    %0 = vector.load %arg1[%c0, %c0_0] : memref<16x16xf32, #tpu.memory_space<vmem>>, vector<16x16xf32>
    %1 = arith.truncf %0 : vector<16x16xf32> to vector<16x16xbf16>
    %c0_1 = arith.constant 0 : index
    %c0_2 = arith.constant 0 : index
    %2 = vector.load %arg2[%c0_1, %c0_2] : memref<16x128xbf16, #tpu.memory_space<vmem>>, vector<16x128xbf16>
    %cst = arith.constant dense<0.000000e+00> : vector<16x128xf32>
    %3 = tpu.matmul %1, %2, %cst {dimension_numbers = #tpu.dot_dimension_numbers<[1], [0], [0], [1], [0, 0, 1, 1], [], []>} : vector<16x16xbf16>, vector<16x128xbf16>, vector<16x128xf32> -> vector<16x128xf32>
    %c0_3 = arith.constant 0 : index
    %c0_4 = arith.constant 0 : index
    %4 = vector.load %arg3[%c0_3, %c0_4] : memref<1x128xf32, #tpu.memory_space<vmem>>, vector<1x128xf32>
    %5 = vector.broadcast %4 : vector<1x128xf32> to vector<16x128xf32>
    %6 = arith.addf %3, %5 : vector<16x128xf32>
    %7 = arith.truncf %6 : vector<16x128xf32> to vector<16x128xbf16>
    %c0_5 = arith.constant 0 : index
    %c0_6 = arith.constant 0 : index
    %8 = vector.load %arg4[%c0_5, %c0_6] : memref<16x128xbf16, #tpu.memory_space<vmem>>, vector<16x128xbf16>
    tpu.vector_store %arg4[%c0_5, %c0_6], %7 {strides = array<i32>} : memref<16x128xbf16, #tpu.memory_space<vmem>>, vector<16x128xbf16>,
    return
  }
  func.func @transform_0(%arg0: i32) -> (i32, i32) {
    %c0_i32 = arith.constant 0 : i32
    %c0_i32_0 = arith.constant 0 : i32
    return %arg0, %c0_i32 : i32, i32
  }
  func.func @transform_1(%arg0: i32) -> (i32, i32) {
    %c0_i32 = arith.constant 0 : i32
    %c0_i32_0 = arith.constant 0 : i32
    %c0_i32_1 = arith.constant 0 : i32
    return %c0_i32, %c0_i32_0 : i32, i32
  }
  func.func @transform_2(%arg0: i32) -> (i32, i32) {
    %c0_i32 = arith.constant 0 : i32
    %c0_i32_0 = arith.constant 0 : i32
    %c0_i32_1 = arith.constant 0 : i32
    return %c0_i32, %c0_i32_0 : i32, i32
  }
  func.func @transform_3(%arg0: i32) -> (i32, i32) {
    %c0_i32 = arith.constant 0 : i32
    %c0_i32_0 = arith.constant 0 : i32
    return %arg0, %c0_i32 : i32, i32
  }
}

</mosaic_0001>

<bundles_post_ra>
// kernel: tpu_custom_call.1
= control target key start
LH: loop header
LB: loop body
LE: loop exit
PB: predicated region body
PF: predicated region fallthrough
CT: control target
= control target key end

     0   :  { %8 = vsyncpa [#allocation3], 0  ;;  %s278_s0 = inlined_call_operand.hbm [shape: f32[16,16], index: 0, kind: input, shape index: {}]   ;;  %s279_s1 = inlined_call_operand.hbm [shape: bf16[16,128], index: 1, kind: input, shape index: {}]   ;;  %s280_s2 = inlined_call_operand.vmem [shape: f32[1,128], index: 2, kind: input, shape index: {}]   ;;  %s281_s3 = inlined_call_operand.hbm [shape: bf16[16,128], index: 3, kind: output, shape index: {}]  }
   0x1   :  { %9 = vsyncpa [#allocation6], 0 }
   0x2   :  { %10 = vsyncpa [#allocation4], 0  ;;  %s231_s12 = smov [#allocation2]  }
   0x3   :  { %s16_s13 = sshll.u32 %s231_s12, 4  ;;  %s17_s13 = int_to_ptr.vmem [resolvable:$true] %s16_s13 }
   0x4   :  { %s173_s14 = scalar_lea.vmem %s17_s13, 256  ;;  %p178_p1 = scmp.lt.s32.totalorder %s17_s13, %s17_s13 }
   0x5   :  { %p174_p0 = scmp.ne.s32.totalorder %s17_s13, %s173_s14  ;;  %p179_p2 = scmp.lt.s32.totalorder %s173_s14, %s173_s14 }
   0x7   :  { %p180_p3 = por %p179_p2, %p178_p1 }
   0x9   :  { %p181_p4 = pnand %p180_p3, %p174_p0 }
   0xb   :  { %184 = shalt.err (!%p181_p4)
}
   0xc   :  { %s232_s15 = smov 128   ;;  %s233_s16 = smov 8  }
   0xd   :  { %22 = dma.hbm_to_vmem [thread:$0]  %s278_s0, 256, %s17_s13, [#allocation3], %s232_s15, %s232_s15, %s233_s16  }
   0xe   :  { %s234_s19 = smov [#allocation5]  }
   0xf   :  { %s28_s20 = sshll.u32 %s234_s19, 4  ;;  %s29_s20 = int_to_ptr.vmem [resolvable:$true] %s28_s20 }
  0x10   :  { %s193_s21 = scalar_lea.vmem %s29_s20, 128  ;;  %p198_p6 = scmp.lt.s32.totalorder %s29_s20, %s29_s20 }
  0x11   :  { %p194_p5 = scmp.ne.s32.totalorder %s29_s20, %s193_s21  ;;  %p199_p7 = scmp.lt.s32.totalorder %s193_s21, %s193_s21 }
  0x13   :  { %p200_p8 = por %p199_p7, %p198_p6 }
  0x15   :  { %p201_p9 = pnand %p200_p8, %p194_p5 }
  0x17   :  { %204 = shalt.err (!%p201_p9)
}
  0x18   :  { %s235_s22 = smov 64   ;;  %s236_s23 = smov 4  }
  0x19   :  { %34 = dma.hbm_to_vmem [thread:$0]  %s279_s1, 128, %s29_s20, [#allocation6], %s235_s22, %s235_s22, %s236_s23  }
  0x1a   :  { %225 = dma.done.wait [#allocation3], 256  }
  0x1b   :  { %226 = vsyncadd [#allocation3], 4294967040 }
  0x1c   :  { %227 = dma.done.wait [#allocation6], 128  }
  0x1d   :  { %228 = vsyncadd [#allocation6], 4294967168  ;;  %v237_v0 = vmov 0.0   ;;  %vm238_vm0 = vmmov 0   ;;  %v164_v1 = vld [vmem:[#allocation5] sm:$0xff]   ;;  %v44_v2 = vld [vmem:[#allocation2] sm:$0xff] }
  0x1e   :  { %149 = vmatprep.subr.bf16.mxu0 %v237_v0  ;;  %151 = vmatprep.mubr.msk.bf16.mxu0 %vm238_vm0, %v237_v0  ;;  %v45_v3 = vld [vmem:[#allocation2 + $0x8] sm:$0xff]  ;;  %vm62_vm1 = vcmask 130048   ;;  %v135_v6 = vld [vmem:[%s280_s2] ss:$0 sm:$0xff]  ;;  %s239_s1 = smov [#allocation7]  }
  0x1f   :  { %150 = vmatpush3.bf16.msra.mxu0 %v164_v1  ;;  %v46_v4 = vpack.c.bf16 %v45_v3, %v44_v2  ;;  %s122_s27 = sshll.u32 %s239_s1, 4  ;;  %s123_s27 = int_to_ptr.vmem [resolvable:$true] %s122_s27 }
  0x20   :  { %s205_s28 = scalar_lea.vmem %s123_s27, 128  ;;  %p210_p11 = scmp.lt.s32.totalorder %s123_s27, %s123_s27 }
  0x21   :  { %p206_p10 = scmp.ne.s32.totalorder %s123_s27, %s205_s28  ;;  %p211_p12 = scmp.lt.s32.totalorder %s205_s28, %s205_s28 }
  0x22   :  { %152 = vmatmul.mubr.msk.bf16.vlgmr.msra.gmra.mxu0 %vm62_vm1, %v46_v4 }
  0x23   :  { %p212_p13 = por %p211_p12, %p210_p11 }
  0x25   :  { %p213_p0 = pnand %p212_p13, %p206_p10 }
  0xe2   :  { %v100_v5 = vpop.f32.mrf.mxu0 }
  0xe3   :  { %v101_v9 = vadd.f32 %v135_v6, %v100_v5 }
  0xe4   :  { %v153_v7 = vpop.f32.mrf.mxu0 }
  0xe6   :  { %v103_v8 = vpop.f32.mrf.mxu0 }
  0xe7   :  { %v104_v10 = vadd.f32 %v135_v6, %v103_v8 }
  0xe8   :  { %v154_v11 = vpop.f32.mrf.mxu0 }
  0xe9   :  { %v145_v12 = vpack.c.bf16 %v104_v10, %v101_v9 }
  0xeb   :  { %146 = vst [vmem:[#allocation7] sm:$0xff] %v145_v12  }
  0xec   :  { %216 = shalt.err (!%p213_p0)
}
  0xed   :  { %128 = dma.vmem_to_hbm [thread:$0]  %s123_s27, 128, %s281_s3, [#allocation4], %s235_s22, %s235_s22, %s236_s23  }
  0xee   :  { %229 = dma.done.wait [#allocation4], 128  }
  0xef   :  { %230 = vsyncadd [#allocation4], 4294967168 }
  0xf0   :  { %132 = vsyncpa [#allocation3], 1 }
  0xf1   :  { %133 = vsyncpa [#allocation6], 1 }
  0xf2   :  { %134 = vsyncpa [#allocation4], 1 }

</bundles_post_ra>
